<compile_context>
chip_gen: v6e
topology: v6e:2x2x1
jax: 0.10.0
libtpu: 0.0.40
codegen_flags: <defaults>
</compile_context>

<pallas_src>
import jax
import jax.numpy as jnp
from jax import lax
from jax.experimental import pallas as pl
from jax.experimental.pallas import tpu as pltpu

LN_EPS = 1e-5  # PyTorch nn.LayerNorm default


def _round_up(x, m):
    return ((x + m - 1) // m) * m


def _cdiv(a, b):
    return (a + b - 1) // b


def _layernorm_f32(h, gamma, beta):
    """LayerNorm in fp32 (biased variance, eps=1e-5) — matches nn.LayerNorm."""
    mean = jnp.mean(h, axis=-1, keepdims=True)
    var = jnp.mean(jnp.square(h - mean), axis=-1, keepdims=True)
    return (h - mean) * lax.rsqrt(var + LN_EPS) * gamma + beta


# -----------------------------------------------------------------------------
# generation / VMEM probing
# -----------------------------------------------------------------------------
def _tpu_info():
    kind = ""
    try:
        kind = (jax.devices()[0].device_kind or "").lower()
    except Exception:
        pass
    is_v7 = "v7" in kind
    vmem_cap = 64 * 1024 * 1024 if is_v7 else 128 * 1024 * 1024
    try:
        cap = int(getattr(pltpu.get_tpu_info(), "vmem_capacity_bytes", 0) or 0)
        if cap > 0:
            vmem_cap = cap
    except Exception:
        pass
    return {"kind": kind, "is_v7": is_v7, "vmem_cap": vmem_cap}


def _probe_buffered_one():
    """Can we single-buffer resident operands via pipeline_mode=pl.Buffered(1)?"""
    if not hasattr(pl, "Buffered"):
        return False
    try:
        pl.BlockSpec((8, 128), lambda i: (0, 0), pipeline_mode=pl.Buffered(1))
        return True
    except TypeError:
        return False


_HAS_BUFFERED_1 = _probe_buffered_one()


def _resident_spec(shape, single_buffered):
    """Same block every grid step -> VMEM-resident; single-buffered when possible."""
    index_map = lambda i: (0, 0)
    if single_buffered and _HAS_BUFFERED_1:
        return pl.BlockSpec(shape, index_map, pipeline_mode=pl.Buffered(1))
    return pl.BlockSpec(shape, index_map)


# -----------------------------------------------------------------------------
# kernels
# -----------------------------------------------------------------------------
def _mlp_kernel_fused(z_ref, c_ref,
                      w1_ref, b1_ref, g1_ref, be1_ref,
                      w2_ref, b2_ref, g2_ref, be2_ref,
                      wo_ref, bo_ref,
                      out_ref, x_scratch):
    """Small / unaligned Dz,Dc: concat z,c in VMEM -> one MXU pass with K=Dz+Dc."""
    dz = z_ref.shape[-1]
    dc = c_ref.shape[-1]
    x_scratch[:, :dz] = z_ref[...].astype(x_scratch.dtype)
    x_scratch[:, dz:dz + dc] = c_ref[...].astype(x_scratch.dtype)

    h = jnp.dot(x_scratch[...].astype(jnp.bfloat16), w1_ref[...],
                preferred_element_type=jnp.float32) + b1_ref[...]
    h = _layernorm_f32(h, g1_ref[...], be1_ref[...])
    h = jnp.maximum(h, 0.0)

    h = jnp.dot(h.astype(jnp.bfloat16), w2_ref[...],
                preferred_element_type=jnp.float32) + b2_ref[...]
    h = _layernorm_f32(h, g2_ref[...], be2_ref[...])
    h = jnp.maximum(h, 0.0)

    y = jnp.dot(h.astype(jnp.bfloat16), wo_ref[...],
                preferred_element_type=jnp.float32) + bo_ref[...]
    out_ref[...] = y.astype(out_ref.dtype)


def _mlp_kernel_split(z_ref, c_ref,
                      w1z_ref, w1c_ref, b1_ref, g1_ref, be1_ref,
                      w2_ref, b2_ref, g2_ref, be2_ref,
                      wo_ref, bo_ref,
                      out_ref):
    """Large, 128-aligned Dz and Dc: two well-filled MXU passes, no concat."""
    z = z_ref[...].astype(jnp.bfloat16)
    c = c_ref[...].astype(jnp.bfloat16)
    h = (jnp.dot(z, w1z_ref[...], preferred_element_type=jnp.float32)
         + jnp.dot(c, w1c_ref[...], preferred_element_type=jnp.float32)
         + b1_ref[...])
    h = _layernorm_f32(h, g1_ref[...], be1_ref[...])
    h = jnp.maximum(h, 0.0)

    h = jnp.dot(h.astype(jnp.bfloat16), w2_ref[...],
                preferred_element_type=jnp.float32) + b2_ref[...]
    h = _layernorm_f32(h, g2_ref[...], be2_ref[...])
    h = jnp.maximum(h, 0.0)

    y = jnp.dot(h.astype(jnp.bfloat16), wo_ref[...],
                preferred_element_type=jnp.float32) + bo_ref[...]
    out_ref[...] = y.astype(out_ref.dtype)


# -----------------------------------------------------------------------------
# params
# -----------------------------------------------------------------------------
def init_params(key, input_shape, hidden_shapes, output_shape):
    """PyTorch-style init: Linear ~ U(-1/sqrt(fan_in), 1/sqrt(fan_in)); LN gamma=1, beta=0.
    Weights stored (fan_in, fan_out) in bf16; biases / LN params in fp32."""
    shapes = [input_shape] + hidden_shapes
    keys = jax.random.split(key, 2 * (len(shapes) - 1) + 2)
    params = {}
    ki = 0
    for i in range(len(shapes) - 1):
        fan_in, fan_out = shapes[i], shapes[i + 1]
        bound = 1.0 / float(fan_in) ** 0.5
        params[f"w{i+1}"] = jax.random.uniform(
            keys[ki], (fan_in, fan_out), jnp.float32, -bound, bound
        ).astype(jnp.bfloat16); ki += 1
        params[f"b{i+1}"] = jax.random.uniform(
            keys[ki], (1, fan_out), jnp.float32, -bound, bound); ki += 1
        params[f"g{i+1}"] = jnp.ones((1, fan_out), jnp.float32)
        params[f"be{i+1}"] = jnp.zeros((1, fan_out), jnp.float32)
    fan_in = shapes[-1]
    bound = 1.0 / float(fan_in) ** 0.5
    params["wo"] = jax.random.uniform(
        keys[ki], (fan_in, output_shape), jnp.float32, -bound, bound
    ).astype(jnp.bfloat16); ki += 1
    params["bo"] = jax.random.uniform(
        keys[ki], (1, output_shape), jnp.float32, -bound, bound); ki += 1
    return params


def prepare_params(params, dz):
    """One-time conversion into the kernel layout (call once, NOT per forward):
    lane-pads the output Linear to a multiple of 128 columns and pre-splits w1
    only when both Dz and Dc are 128-aligned (two-dot path)."""
    out_dim = params["wo"].shape[1]
    out_pad = _round_up(out_dim, 128)
    wo, bo = params["wo"], params["bo"]
    if out_pad != out_dim:
        wo = jnp.pad(wo, ((0, 0), (0, out_pad - out_dim)))
        bo = jnp.pad(bo, ((0, 0), (0, out_pad - out_dim)))
    dc = params["w1"].shape[0] - dz
    fuse = (dz % 128 != 0) or (dc % 128 != 0)   # tiny/unaligned K -> single fused dot
    prepped = {
        "fuse": fuse, "dz": dz, "dc": dc, "out_dim": out_dim, "out_pad": out_pad,
        "b1": params["b1"], "g1": params["g1"], "be1": params["be1"],
        "w2": params["w2"], "b2": params["b2"], "g2": params["g2"], "be2": params["be2"],
        "wo": wo, "bo": bo,
    }
    if fuse:
        prepped["w1"] = params["w1"]
    else:
        prepped["w1z"] = params["w1"][:dz]
        prepped["w1c"] = params["w1"][dz:]
    return prepped


def _xla_forward(z, c, prepped):
    """Functional fallback when resident params exceed the VMEM budget.
    # TODO(synk): N/K-tiled weight-streaming Pallas kernel for this regime."""
    if prepped["fuse"]:
        x = jnp.concatenate([z, c], axis=-1).astype(jnp.bfloat16)
        h = jnp.dot(x, prepped["w1"], preferred_element_type=jnp.float32) + prepped["b1"]
    else:
        h = (jnp.dot(z.astype(jnp.bfloat16), prepped["w1z"], preferred_element_type=jnp.float32)
             + jnp.dot(c.astype(jnp.bfloat16), prepped["w1c"], preferred_element_type=jnp.float32)
             + prepped["b1"])
    h = _layernorm_f32(h, prepped["g1"], prepped["be1"]); h = jnp.maximum(h, 0.0)
    h = jnp.dot(h.astype(jnp.bfloat16), prepped["w2"],
                preferred_element_type=jnp.float32) + prepped["b2"]
    h = _layernorm_f32(h, prepped["g2"], prepped["be2"]); h = jnp.maximum(h, 0.0)
    y = jnp.dot(h.astype(jnp.bfloat16), prepped["wo"],
                preferred_element_type=jnp.float32) + prepped["bo"]
    return y[:, :prepped["out_dim"]]


# -----------------------------------------------------------------------------
# forward
# -----------------------------------------------------------------------------
def multilayer_forward(z, c, prepped, *, tile_b_cap=None, return_padded=False):
    """z: (B, Dz), c: (B, Dc) -> (B, output_shape). `prepped` = prepare_params(...)."""
    B, Dz = z.shape
    Bc, Dc = c.shape
    assert B == Bc and Dz == prepped["dz"] and Dc == prepped["dc"]
    H1 = prepped["b1"].shape[1]
    H2 = prepped["b2"].shape[1]
    out_dim, out_pad, fuse = prepped["out_dim"], prepped["out_pad"], prepped["fuse"]

    info = _tpu_info()
    # generation-aware budget: ~100 MiB usable on 128 MiB parts, ~48 MiB on v7x (64 MiB/TC)
    vmem_usable = min(int(info["vmem_cap"] * 0.78), 100 * 1024 * 1024)

    if fuse:
        weights = (prepped["w1"], prepped["b1"], prepped["g1"], prepped["be1"],
                   prepped["w2"], prepped["b2"], prepped["g2"], prepped["be2"],
                   prepped["wo"], prepped["bo"])
        kernel = _mlp_kernel_fused
    else:
        weights = (prepped["w1z"], prepped["w1c"],
                   prepped["b1"], prepped["g1"], prepped["be1"],
                   prepped["w2"], prepped["b2"], prepped["g2"], prepped["be2"],
                   prepped["wo"], prepped["bo"])
        kernel = _mlp_kernel_split
    param_bytes = sum(int(w.size) * w.dtype.itemsize for w in weights)

    first_bufs = 1 if _HAS_BUFFERED_1 else 2
    if param_bytes * first_bufs + (4 << 20) > vmem_usable:
        y = _xla_forward(z, c, prepped)
        return y if not return_padded else jnp.pad(y, ((0, 0), (0, out_pad - out_dim)))

    # streamed tensors in bf16: halves per-tile DMA traffic and I/O VMEM
    z = z.astype(jnp.bfloat16)
    c = c.astype(jnp.bfloat16)

    def _run(single_buffered):
        resident_bufs = 1 if (single_buffered and _HAS_BUFFERED_1) else 2
        resident_bytes = param_bytes * resident_bufs

        # ---- generation-aware batch tile (budget-derived, balanced) ------------
        per_row_bytes = (2 * (Dz + Dc) * 2                 # bf16 z/c, double-buffered
                         + 2 * out_pad * 4                 # fp32 out, double-buffered
                         + 4 * max(H1, H2, out_pad) * 4)   # live fp32 intermediates
        cap = tile_b_cap if tile_b_cap is not None else (256 if info["is_v7"] else 512)
        budget_rows = max((vmem_usable - resident_bytes) // per_row_bytes, 8)
        tile_cap = max(8, min(cap, (budget_rows // 8) * 8))

        if B <= tile_cap:
            tile_b, n_tiles = _round_up(max(B, 1), 8), 1
        else:
            n_tiles = _cdiv(B, tile_cap)
            tile_b = _round_up(_cdiv(B, n_tiles), 8)
        B_pad = n_tiles * tile_b

        zz, cc = z, c
        if B_pad != B:
            zz = jnp.pad(zz, ((0, B_pad - B), (0, 0)))
            cc = jnp.pad(cc, ((0, B_pad - B), (0, 0)))

        in_specs = [pl.BlockSpec((tile_b, Dz), lambda i: (i, 0)),
                    pl.BlockSpec((tile_b, Dc), lambda i: (i, 0))]
        in_specs += [_resident_spec(w.shape, single_buffered) for w in weights]
        out_specs = pl.BlockSpec((tile_b, out_pad), lambda i: (i, 0))

        scratch_shapes = []
        if fuse:
            scratch_shapes = [pltpu.VMEM((tile_b, Dz + Dc), jnp.float32)]

        io_bytes = 2 * tile_b * (Dz + Dc) * 2 + 2 * tile_b * out_pad * 4
        work_bytes = 4 * tile_b * max(H1, H2, out_pad) * 4 + tile_b * (Dz + Dc) * 4
        vmem_limit = int(1.25 * (resident_bytes + io_bytes + work_bytes))
        vmem_limit = min(max(vmem_limit, 16 * 1024 * 1024), vmem_usable)

        # v7x: actually shard the batch axis across the two TensorCores
        if info["is_v7"] and hasattr(pltpu, "CORE_PARALLEL") and n_tiles >= 2:
            dim_sem = (pltpu.CORE_PARALLEL,)
        else:
            dim_sem = ("parallel",)

        flops = 2 * B_pad * ((Dz + Dc) * H1 + H1 * H2 + H2 * out_pad)
        bytes_accessed = (int(zz.size) * zz.dtype.itemsize
                          + int(cc.size) * cc.dtype.itemsize
                          + param_bytes + B_pad * out_pad * 4)
        cost = pl.CostEstimate(flops=flops, transcendentals=2 * B_pad,
                               bytes_accessed=bytes_accessed)

        out = pl.pallas_call(
            kernel,
            out_shape=jax.ShapeDtypeStruct((B_pad, out_pad), jnp.float32),
            grid=(n_tiles,),
            in_specs=in_specs,
            out_specs=out_specs,
            scratch_shapes=scratch_shapes,
            compiler_params=pltpu.CompilerParams(
                dimension_semantics=dim_sem,
                vmem_limit_bytes=vmem_limit,
            ),
            cost_estimate=cost,
        )(zz, cc, *weights)
        return out

    try:
        out = _run(single_buffered=True)
    except Exception:
        if not _HAS_BUFFERED_1:
            raise
        out = _run(single_buffered=False)   # safety net: default double-buffering

    if return_padded:
        return out[:B]                       # keep lane-padded columns (no extra pass)
    return out[:B, :out_dim]


# -----------------------------------------------------------------------------
# pure-JAX reference (identical dtype handling: bf16 dot inputs, fp32 accum/LN)
# -----------------------------------------------------------------------------
def reference_forward(z, c, params):
    x = jnp.concatenate([z, c], axis=-1).astype(jnp.bfloat16)
    h = jnp.dot(x, params["w1"], preferred_element_type=jnp.float32) + params["b1"]
    h = _layernorm_f32(h, params["g1"], params["be1"])
    h = jnp.maximum(h, 0.0)
    h = jnp.dot(h.astype(jnp.bfloat16), params["w2"],
                preferred_element_type=jnp.float32) + params["b2"]
    h = _layernorm_f32(h, params["g2"], params["be2"])
    h = jnp.maximum(h, 0.0)
    return jnp.dot(h.astype(jnp.bfloat16), params["wo"],
                   preferred_element_type=jnp.float32) + params["bo"]


if __name__ == "__main__":
    key = jax.random.PRNGKey(0)
    k_z, k_c, k_p = jax.random.split(key, 3)

    # Small shapes consistent with forward(z, c): input_shape = Dz + Dc.
    B, Dz, Dc = 2, 8, 8
    input_shape = Dz + Dc          # 16
    hidden_shapes = [32, 32]
    output_shape = 4

    z = jax.random.normal(k_z, (B, Dz), jnp.float32)
    c = jax.random.normal(k_c, (B, Dc), jnp.float32)
    params = init_params(k_p, input_shape, hidden_shapes, output_shape)
    prepped = prepare_params(params, Dz)   # one-time; hoisted out of the hot path

    out = multilayer_forward(z, c, prepped)
    jax.block_until_ready(out)

    ref = reference_forward(z, c, params)
    assert out.shape == (B, output_shape)
    assert jnp.allclose(out, ref, atol=1e-2, rtol=1e-2), "mismatch vs. JAX reference"

    print("KERNEL_OK")
</pallas_src>

<mosaic_0001>
module attributes {stable_mosaic.version = 11 : i64} {
  func.func @_mlp_kernel_fused(%arg0: i32, %arg1: memref<8x8xbf16, #tpu.memory_space<vmem>>, %arg2: memref<8x8xbf16, #tpu.memory_space<vmem>>, %arg3: memref<16x32xbf16, #tpu.memory_space<vmem>>, %arg4: memref<1x32xf32, #tpu.memory_space<vmem>>, %arg5: memref<1x32xf32, #tpu.memory_space<vmem>>, %arg6: memref<1x32xf32, #tpu.memory_space<vmem>>, %arg7: memref<32x32xbf16, #tpu.memory_space<vmem>>, %arg8: memref<1x32xf32, #tpu.memory_space<vmem>>, %arg9: memref<1x32xf32, #tpu.memory_space<vmem>>, %arg10: memref<1x32xf32, #tpu.memory_space<vmem>>, %arg11: memref<32x128xbf16, #tpu.memory_space<vmem>>, %arg12: memref<1x128xf32, #tpu.memory_space<vmem>>, %arg13: memref<8x128xf32, #tpu.memory_space<vmem>>, %arg14: memref<8x16xf32, #tpu.memory_space<vmem>>) attributes {dimension_semantics = [#tpu.dimension_semantics<parallel>], iteration_bounds = array<i64: 1>, scalar_prefetch = 0 : i64, scratch_operands = 1 : i64, tpu.core_type = #tpu.core_type<tc>, window_params = [{transform_indices = @transform_0, window_bounds = array<i64: 8, 8>}, {transform_indices = @transform_1, window_bounds = array<i64: 8, 8>}, {pipeline_mode = #tpu.pipeline_mode<synchronous>, transform_indices = @transform_2, window_bounds = array<i64: 16, 32>}, {pipeline_mode = #tpu.pipeline_mode<synchronous>, transform_indices = @transform_3, window_bounds = array<i64: 1, 32>}, {pipeline_mode = #tpu.pipeline_mode<synchronous>, transform_indices = @transform_4, window_bounds = array<i64: 1, 32>}, {pipeline_mode = #tpu.pipeline_mode<synchronous>, transform_indices = @transform_5, window_bounds = array<i64: 1, 32>}, {pipeline_mode = #tpu.pipeline_mode<synchronous>, transform_indices = @transform_6, window_bounds = array<i64: 32, 32>}, {pipeline_mode = #tpu.pipeline_mode<synchronous>, transform_indices = @transform_7, window_bounds = array<i64: 1, 32>}, {pipeline_mode = #tpu.pipeline_mode<synchronous>, transform_indices = @transform_8, window_bounds = array<i64: 1, 32>}, {pipeline_mode = #tpu.pipeline_mode<synchronous>, transform_indices = @transform_9, window_bounds = array<i64: 1, 32>}, {pipeline_mode = #tpu.pipeline_mode<synchronous>, transform_indices = @transform_10, window_bounds = array<i64: 32, 128>}, {pipeline_mode = #tpu.pipeline_mode<synchronous>, transform_indices = @transform_11, window_bounds = array<i64: 1, 128>}, {transform_indices = @transform_12, window_bounds = array<i64: 8, 128>}]} {
    %c0 = arith.constant 0 : index
    %c0_0 = arith.constant 0 : index
    %0 = vector.load %arg1[%c0, %c0_0] : memref<8x8xbf16, #tpu.memory_space<vmem>>, vector<8x8xbf16>
    %1 = arith.extf %0 : vector<8x8xbf16> to vector<8x8xf32>
    %c0_1 = arith.constant 0 : index
    %c0_2 = arith.constant 0 : index
    %2 = vector.load %arg14[%c0_1, %c0_2] : memref<8x16xf32, #tpu.memory_space<vmem>>, vector<8x8xf32>
    tpu.vector_store %arg14[%c0_1, %c0_2], %1 {strides = array<i32>} : memref<8x16xf32, #tpu.memory_space<vmem>>, vector<8x8xf32>,
    %c0_3 = arith.constant 0 : index
    %c0_4 = arith.constant 0 : index
    %3 = vector.load %arg2[%c0_3, %c0_4] : memref<8x8xbf16, #tpu.memory_space<vmem>>, vector<8x8xbf16>
    %4 = arith.extf %3 : vector<8x8xbf16> to vector<8x8xf32>
    %c0_5 = arith.constant 0 : index
    %c8 = arith.constant 8 : index
    %5 = vector.load %arg14[%c0_5, %c8] : memref<8x16xf32, #tpu.memory_space<vmem>>, vector<8x8xf32>
    tpu.vector_store %arg14[%c0_5, %c8], %4 {strides = array<i32>} : memref<8x16xf32, #tpu.memory_space<vmem>>, vector<8x8xf32>,
    %c0_6 = arith.constant 0 : index
    %c0_7 = arith.constant 0 : index
    %6 = vector.load %arg14[%c0_6, %c0_7] : memref<8x16xf32, #tpu.memory_space<vmem>>, vector<8x16xf32>
    %7 = arith.truncf %6 : vector<8x16xf32> to vector<8x16xbf16>
    %c0_8 = arith.constant 0 : index
    %c0_9 = arith.constant 0 : index
    %8 = vector.load %arg3[%c0_8, %c0_9] : memref<16x32xbf16, #tpu.memory_space<vmem>>, vector<16x32xbf16>
    %cst = arith.constant dense<0.000000e+00> : vector<8x32xf32>
    %9 = tpu.matmul %7, %8, %cst {dimension_numbers = #tpu.dot_dimension_numbers<[1], [0], [0], [1], [0, 0, 1, 1], [], []>} : vector<8x16xbf16>, vector<16x32xbf16>, vector<8x32xf32> -> vector<8x32xf32>
    %c0_10 = arith.constant 0 : index
    %c0_11 = arith.constant 0 : index
    %10 = vector.load %arg4[%c0_10, %c0_11] : memref<1x32xf32, #tpu.memory_space<vmem>>, vector<1x32xf32>
    %11 = vector.broadcast %10 : vector<1x32xf32> to vector<8x32xf32>
    %12 = arith.addf %9, %11 : vector<8x32xf32>
    %c0_12 = arith.constant 0 : index
    %c0_13 = arith.constant 0 : index
    %13 = vector.load %arg5[%c0_12, %c0_13] : memref<1x32xf32, #tpu.memory_space<vmem>>, vector<1x32xf32>
    %c0_14 = arith.constant 0 : index
    %c0_15 = arith.constant 0 : index
    %14 = vector.load %arg6[%c0_14, %c0_15] : memref<1x32xf32, #tpu.memory_space<vmem>>, vector<1x32xf32>
    %cst_16 = arith.constant dense<0.000000e+00> : vector<8xf32>
    %15 = vector.multi_reduction <add>, %12, %cst_16 [1] : vector<8x32xf32> to vector<8xf32>
    %16 = vector.shape_cast %15 : vector<8xf32> to vector<8x1xf32>
    %cst_17 = arith.constant 3.200000e+01 : f32
    %17 = vector.broadcast %cst_17 : f32 to vector<8x1xf32>
    %18 = arith.divf %16, %17 : vector<8x1xf32>
    %19 = vector.broadcast %18 : vector<8x1xf32> to vector<8x32xf32>
    %20 = arith.subf %12, %19 : vector<8x32xf32>
    %21 = arith.mulf %20, %20 : vector<8x32xf32>
    %cst_18 = arith.constant dense<0.000000e+00> : vector<8xf32>
    %22 = vector.multi_reduction <add>, %21, %cst_18 [1] : vector<8x32xf32> to vector<8xf32>
    %23 = vector.shape_cast %22 : vector<8xf32> to vector<8x1xf32>
    %cst_19 = arith.constant 3.200000e+01 : f32
    %24 = vector.broadcast %cst_19 : f32 to vector<8x1xf32>
    %25 = arith.divf %23, %24 : vector<8x1xf32>
    %26 = vector.broadcast %18 : vector<8x1xf32> to vector<8x32xf32>
    %27 = arith.subf %12, %26 : vector<8x32xf32>
    %cst_20 = arith.constant 9.99999974E-6 : f32
    %28 = vector.broadcast %cst_20 : f32 to vector<8x1xf32>
    %29 = arith.addf %25, %28 : vector<8x1xf32>
    %30 = math.rsqrt %29 : vector<8x1xf32>
    %31 = vector.broadcast %30 : vector<8x1xf32> to vector<8x32xf32>
    %32 = arith.mulf %27, %31 : vector<8x32xf32>
    %33 = vector.broadcast %13 : vector<1x32xf32> to vector<8x32xf32>
    %34 = arith.mulf %32, %33 : vector<8x32xf32>
    %35 = vector.broadcast %14 : vector<1x32xf32> to vector<8x32xf32>
    %36 = arith.addf %34, %35 : vector<8x32xf32>
    %cst_21 = arith.constant 0.000000e+00 : f32
    %37 = vector.broadcast %cst_21 : f32 to vector<8x32xf32>
    %38 = arith.maximumf %36, %37 : vector<8x32xf32>
    %39 = arith.truncf %38 : vector<8x32xf32> to vector<8x32xbf16>
    %c0_22 = arith.constant 0 : index
    %c0_23 = arith.constant 0 : index
    %40 = vector.load %arg7[%c0_22, %c0_23] : memref<32x32xbf16, #tpu.memory_space<vmem>>, vector<32x32xbf16>
    %cst_24 = arith.constant dense<0.000000e+00> : vector<8x32xf32>
    %41 = tpu.matmul %39, %40, %cst_24 {dimension_numbers = #tpu.dot_dimension_numbers<[1], [0], [0], [1], [0, 0, 1, 1], [], []>} : vector<8x32xbf16>, vector<32x32xbf16>, vector<8x32xf32> -> vector<8x32xf32>
    %c0_25 = arith.constant 0 : index
    %c0_26 = arith.constant 0 : index
    %42 = vector.load %arg8[%c0_25, %c0_26] : memref<1x32xf32, #tpu.memory_space<vmem>>, vector<1x32xf32>
    %43 = vector.broadcast %42 : vector<1x32xf32> to vector<8x32xf32>
    %44 = arith.addf %41, %43 : vector<8x32xf32>
    %c0_27 = arith.constant 0 : index
    %c0_28 = arith.constant 0 : index
    %45 = vector.load %arg9[%c0_27, %c0_28] : memref<1x32xf32, #tpu.memory_space<vmem>>, vector<1x32xf32>
    %c0_29 = arith.constant 0 : index
    %c0_30 = arith.constant 0 : index
    %46 = vector.load %arg10[%c0_29, %c0_30] : memref<1x32xf32, #tpu.memory_space<vmem>>, vector<1x32xf32>
    %cst_31 = arith.constant dense<0.000000e+00> : vector<8xf32>
    %47 = vector.multi_reduction <add>, %44, %cst_31 [1] : vector<8x32xf32> to vector<8xf32>
    %48 = vector.shape_cast %47 : vector<8xf32> to vector<8x1xf32>
    %cst_32 = arith.constant 3.200000e+01 : f32
    %49 = vector.broadcast %cst_32 : f32 to vector<8x1xf32>
    %50 = arith.divf %48, %49 : vector<8x1xf32>
    %51 = vector.broadcast %50 : vector<8x1xf32> to vector<8x32xf32>
    %52 = arith.subf %44, %51 : vector<8x32xf32>
    %53 = arith.mulf %52, %52 : vector<8x32xf32>
    %cst_33 = arith.constant dense<0.000000e+00> : vector<8xf32>
    %54 = vector.multi_reduction <add>, %53, %cst_33 [1] : vector<8x32xf32> to vector<8xf32>
    %55 = vector.shape_cast %54 : vector<8xf32> to vector<8x1xf32>
    %cst_34 = arith.constant 3.200000e+01 : f32
    %56 = vector.broadcast %cst_34 : f32 to vector<8x1xf32>
    %57 = arith.divf %55, %56 : vector<8x1xf32>
    %58 = vector.broadcast %50 : vector<8x1xf32> to vector<8x32xf32>
    %59 = arith.subf %44, %58 : vector<8x32xf32>
    %cst_35 = arith.constant 9.99999974E-6 : f32
    %60 = vector.broadcast %cst_35 : f32 to vector<8x1xf32>
    %61 = arith.addf %57, %60 : vector<8x1xf32>
    %62 = math.rsqrt %61 : vector<8x1xf32>
    %63 = vector.broadcast %62 : vector<8x1xf32> to vector<8x32xf32>
    %64 = arith.mulf %59, %63 : vector<8x32xf32>
    %65 = vector.broadcast %45 : vector<1x32xf32> to vector<8x32xf32>
    %66 = arith.mulf %64, %65 : vector<8x32xf32>
    %67 = vector.broadcast %46 : vector<1x32xf32> to vector<8x32xf32>
    %68 = arith.addf %66, %67 : vector<8x32xf32>
    %cst_36 = arith.constant 0.000000e+00 : f32
    %69 = vector.broadcast %cst_36 : f32 to vector<8x32xf32>
    %70 = arith.maximumf %68, %69 : vector<8x32xf32>
    %71 = arith.truncf %70 : vector<8x32xf32> to vector<8x32xbf16>
    %c0_37 = arith.constant 0 : index
    %c0_38 = arith.constant 0 : index
    %72 = vector.load %arg11[%c0_37, %c0_38] : memref<32x128xbf16, #tpu.memory_space<vmem>>, vector<32x128xbf16>
    %cst_39 = arith.constant dense<0.000000e+00> : vector<8x128xf32>
    %73 = tpu.matmul %71, %72, %cst_39 {dimension_numbers = #tpu.dot_dimension_numbers<[1], [0], [0], [1], [0, 0, 1, 1], [], []>} : vector<8x32xbf16>, vector<32x128xbf16>, vector<8x128xf32> -> vector<8x128xf32>
    %c0_40 = arith.constant 0 : index
    %c0_41 = arith.constant 0 : index
    %74 = vector.load %arg12[%c0_40, %c0_41] : memref<1x128xf32, #tpu.memory_space<vmem>>, vector<1x128xf32>
    %75 = vector.broadcast %74 : vector<1x128xf32> to vector<8x128xf32>
    %76 = arith.addf %73, %75 : vector<8x128xf32>
    %c0_42 = arith.constant 0 : index
    %c0_43 = arith.constant 0 : index
    %77 = vector.load %arg13[%c0_42, %c0_43] : memref<8x128xf32, #tpu.memory_space<vmem>>, vector<8x128xf32>
    tpu.vector_store %arg13[%c0_42, %c0_43], %76 {strides = array<i32>} : memref<8x128xf32, #tpu.memory_space<vmem>>, vector<8x128xf32>,
    return
  }
  func.func @transform_0(%arg0: i32) -> (i32, i32) {
    %c0_i32 = arith.constant 0 : i32
    %c0_i32_0 = arith.constant 0 : i32
    return %arg0, %c0_i32 : i32, i32
  }
  func.func @transform_1(%arg0: i32) -> (i32, i32) {
    %c0_i32 = arith.constant 0 : i32
    %c0_i32_0 = arith.constant 0 : i32
    return %arg0, %c0_i32 : i32, i32
  }
  func.func @transform_2(%arg0: i32) -> (i32, i32) {
    %c0_i32 = arith.constant 0 : i32
    %c0_i32_0 = arith.constant 0 : i32
    %c0_i32_1 = arith.constant 0 : i32
    return %c0_i32, %c0_i32_0 : i32, i32
  }
  func.func @transform_3(%arg0: i32) -> (i32, i32) {
    %c0_i32 = arith.constant 0 : i32
    %c0_i32_0 = arith.constant 0 : i32
    %c0_i32_1 = arith.constant 0 : i32
    return %c0_i32, %c0_i32_0 : i32, i32
  }
  func.func @transform_4(%arg0: i32) -> (i32, i32) {
    %c0_i32 = arith.constant 0 : i32
    %c0_i32_0 = arith.constant 0 : i32
    %c0_i32_1 = arith.constant 0 : i32
    return %c0_i32, %c0_i32_0 : i32, i32
  }
  func.func @transform_5(%arg0: i32) -> (i32, i32) {
    %c0_i32 = arith.constant 0 : i32
    %c0_i32_0 = arith.constant 0 : i32
    %c0_i32_1 = arith.constant 0 : i32
    return %c0_i32, %c0_i32_0 : i32, i32
  }
  func.func @transform_6(%arg0: i32) -> (i32, i32) {
    %c0_i32 = arith.constant 0 : i32
    %c0_i32_0 = arith.constant 0 : i32
    %c0_i32_1 = arith.constant 0 : i32
    return %c0_i32, %c0_i32_0 : i32, i32
  }
  func.func @transform_7(%arg0: i32) -> (i32, i32) {
    %c0_i32 = arith.constant 0 : i32
    %c0_i32_0 = arith.constant 0 : i32
    %c0_i32_1 = arith.constant 0 : i32
    return %c0_i32, %c0_i32_0 : i32, i32
  }
  func.func @transform_8(%arg0: i32) -> (i32, i32) {
    %c0_i32 = arith.constant 0 : i32
    %c0_i32_0 = arith.constant 0 : i32
    %c0_i32_1 = arith.constant 0 : i32
    return %c0_i32, %c0_i32_0 : i32, i32
  }
  func.func @transform_9(%arg0: i32) -> (i32, i32) {
    %c0_i32 = arith.constant 0 : i32
    %c0_i32_0 = arith.constant 0 : i32
    %c0_i32_1 = arith.constant 0 : i32
    return %c0_i32, %c0_i32_0 : i32, i32
  }
  func.func @transform_10(%arg0: i32) -> (i32, i32) {
    %c0_i32 = arith.constant 0 : i32
    %c0_i32_0 = arith.constant 0 : i32
    %c0_i32_1 = arith.constant 0 : i32
    return %c0_i32, %c0_i32_0 : i32, i32
  }
  func.func @transform_11(%arg0: i32) -> (i32, i32) {
    %c0_i32 = arith.constant 0 : i32
    %c0_i32_0 = arith.constant 0 : i32
    %c0_i32_1 = arith.constant 0 : i32
    return %c0_i32, %c0_i32_0 : i32, i32
  }
  func.func @transform_12(%arg0: i32) -> (i32, i32) {
    %c0_i32 = arith.constant 0 : i32
    %c0_i32_0 = arith.constant 0 : i32
    return %arg0, %c0_i32 : i32, i32
  }
}

module attributes {stable_mosaic.version = 11 : i64} {
  func.func @_mlp_kernel_fused(%arg0: i32, %arg1: memref<8x8xbf16, #tpu.memory_space<vmem>>, %arg2: memref<8x8xbf16, #tpu.memory_space<vmem>>, %arg3: memref<16x32xbf16, #tpu.memory_space<vmem>>, %arg4: memref<1x32xf32, #tpu.memory_space<vmem>>, %arg5: memref<1x32xf32, #tpu.memory_space<vmem>>, %arg6: memref<1x32xf32, #tpu.memory_space<vmem>>, %arg7: memref<32x32xbf16, #tpu.memory_space<vmem>>, %arg8: memref<1x32xf32, #tpu.memory_space<vmem>>, %arg9: memref<1x32xf32, #tpu.memory_space<vmem>>, %arg10: memref<1x32xf32, #tpu.memory_space<vmem>>, %arg11: memref<32x128xbf16, #tpu.memory_space<vmem>>, %arg12: memref<1x128xf32, #tpu.memory_space<vmem>>, %arg13: memref<8x128xf32, #tpu.memory_space<vmem>>, %arg14: memref<8x16xf32, #tpu.memory_space<vmem>>) attributes {dimension_semantics = [#tpu.dimension_semantics<parallel>], iteration_bounds = array<i64: 1>, scalar_prefetch = 0 : i64, scratch_operands = 1 : i64, tpu.core_type = #tpu.core_type<tc>, window_params = [{transform_indices = @transform_0, window_bounds = array<i64: 8, 8>}, {transform_indices = @transform_1, window_bounds = array<i64: 8, 8>}, {pipeline_mode = #tpu.pipeline_mode<synchronous>, transform_indices = @transform_2, window_bounds = array<i64: 16, 32>}, {pipeline_mode = #tpu.pipeline_mode<synchronous>, transform_indices = @transform_3, window_bounds = array<i64: 1, 32>}, {pipeline_mode = #tpu.pipeline_mode<synchronous>, transform_indices = @transform_4, window_bounds = array<i64: 1, 32>}, {pipeline_mode = #tpu.pipeline_mode<synchronous>, transform_indices = @transform_5, window_bounds = array<i64: 1, 32>}, {pipeline_mode = #tpu.pipeline_mode<synchronous>, transform_indices = @transform_6, window_bounds = array<i64: 32, 32>}, {pipeline_mode = #tpu.pipeline_mode<synchronous>, transform_indices = @transform_7, window_bounds = array<i64: 1, 32>}, {pipeline_mode = #tpu.pipeline_mode<synchronous>, transform_indices = @transform_8, window_bounds = array<i64: 1, 32>}, {pipeline_mode = #tpu.pipeline_mode<synchronous>, transform_indices = @transform_9, window_bounds = array<i64: 1, 32>}, {pipeline_mode = #tpu.pipeline_mode<synchronous>, transform_indices = @transform_10, window_bounds = array<i64: 32, 128>}, {pipeline_mode = #tpu.pipeline_mode<synchronous>, transform_indices = @transform_11, window_bounds = array<i64: 1, 128>}, {transform_indices = @transform_12, window_bounds = array<i64: 8, 128>}]} {
    %c0 = arith.constant 0 : index
    %c0_0 = arith.constant 0 : index
    %0 = vector.load %arg1[%c0, %c0_0] : memref<8x8xbf16, #tpu.memory_space<vmem>>, vector<8x8xbf16>
    %1 = arith.extf %0 : vector<8x8xbf16> to vector<8x8xf32>
    %c0_1 = arith.constant 0 : index
    %c0_2 = arith.constant 0 : index
    %2 = vector.load %arg14[%c0_1, %c0_2] : memref<8x16xf32, #tpu.memory_space<vmem>>, vector<8x8xf32>
    tpu.vector_store %arg14[%c0_1, %c0_2], %1 {strides = array<i32>} : memref<8x16xf32, #tpu.memory_space<vmem>>, vector<8x8xf32>,
    %c0_3 = arith.constant 0 : index
    %c0_4 = arith.constant 0 : index
    %3 = vector.load %arg2[%c0_3, %c0_4] : memref<8x8xbf16, #tpu.memory_space<vmem>>, vector<8x8xbf16>
    %4 = arith.extf %3 : vector<8x8xbf16> to vector<8x8xf32>
    %c0_5 = arith.constant 0 : index
    %c8 = arith.constant 8 : index
    %5 = vector.load %arg14[%c0_5, %c8] : memref<8x16xf32, #tpu.memory_space<vmem>>, vector<8x8xf32>
    tpu.vector_store %arg14[%c0_5, %c8], %4 {strides = array<i32>} : memref<8x16xf32, #tpu.memory_space<vmem>>, vector<8x8xf32>,
    %c0_6 = arith.constant 0 : index
    %c0_7 = arith.constant 0 : index
    %6 = vector.load %arg14[%c0_6, %c0_7] : memref<8x16xf32, #tpu.memory_space<vmem>>, vector<8x16xf32>
    %7 = arith.truncf %6 : vector<8x16xf32> to vector<8x16xbf16>
    %c0_8 = arith.constant 0 : index
    %c0_9 = arith.constant 0 : index
    %8 = vector.load %arg3[%c0_8, %c0_9] : memref<16x32xbf16, #tpu.memory_space<vmem>>, vector<16x32xbf16>
    %cst = arith.constant dense<0.000000e+00> : vector<8x32xf32>
    %9 = tpu.matmul %7, %8, %cst {dimension_numbers = #tpu.dot_dimension_numbers<[1], [0], [0], [1], [0, 0, 1, 1], [], []>} : vector<8x16xbf16>, vector<16x32xbf16>, vector<8x32xf32> -> vector<8x32xf32>
    %c0_10 = arith.constant 0 : index
    %c0_11 = arith.constant 0 : index
    %10 = vector.load %arg4[%c0_10, %c0_11] : memref<1x32xf32, #tpu.memory_space<vmem>>, vector<1x32xf32>
    %11 = vector.broadcast %10 : vector<1x32xf32> to vector<8x32xf32>
    %12 = arith.addf %9, %11 : vector<8x32xf32>
    %c0_12 = arith.constant 0 : index
    %c0_13 = arith.constant 0 : index
    %13 = vector.load %arg5[%c0_12, %c0_13] : memref<1x32xf32, #tpu.memory_space<vmem>>, vector<1x32xf32>
    %c0_14 = arith.constant 0 : index
    %c0_15 = arith.constant 0 : index
    %14 = vector.load %arg6[%c0_14, %c0_15] : memref<1x32xf32, #tpu.memory_space<vmem>>, vector<1x32xf32>
    %cst_16 = arith.constant dense<0.000000e+00> : vector<8xf32>
    %15 = vector.multi_reduction <add>, %12, %cst_16 [1] : vector<8x32xf32> to vector<8xf32>
    %16 = vector.shape_cast %15 : vector<8xf32> to vector<8x1xf32>
    %cst_17 = arith.constant 3.200000e+01 : f32
    %17 = vector.broadcast %cst_17 : f32 to vector<8x1xf32>
    %18 = arith.divf %16, %17 : vector<8x1xf32>
    %19 = vector.broadcast %18 : vector<8x1xf32> to vector<8x32xf32>
    %20 = arith.subf %12, %19 : vector<8x32xf32>
    %21 = arith.mulf %20, %20 : vector<8x32xf32>
    %cst_18 = arith.constant dense<0.000000e+00> : vector<8xf32>
    %22 = vector.multi_reduction <add>, %21, %cst_18 [1] : vector<8x32xf32> to vector<8xf32>
    %23 = vector.shape_cast %22 : vector<8xf32> to vector<8x1xf32>
    %cst_19 = arith.constant 3.200000e+01 : f32
    %24 = vector.broadcast %cst_19 : f32 to vector<8x1xf32>
    %25 = arith.divf %23, %24 : vector<8x1xf32>
    %26 = vector.broadcast %18 : vector<8x1xf32> to vector<8x32xf32>
    %27 = arith.subf %12, %26 : vector<8x32xf32>
    %cst_20 = arith.constant 9.99999974E-6 : f32
    %28 = vector.broadcast %cst_20 : f32 to vector<8x1xf32>
    %29 = arith.addf %25, %28 : vector<8x1xf32>
    %30 = math.rsqrt %29 : vector<8x1xf32>
    %31 = vector.broadcast %30 : vector<8x1xf32> to vector<8x32xf32>
    %32 = arith.mulf %27, %31 : vector<8x32xf32>
    %33 = vector.broadcast %13 : vector<1x32xf32> to vector<8x32xf32>
    %34 = arith.mulf %32, %33 : vector<8x32xf32>
    %35 = vector.broadcast %14 : vector<1x32xf32> to vector<8x32xf32>
    %36 = arith.addf %34, %35 : vector<8x32xf32>
    %cst_21 = arith.constant 0.000000e+00 : f32
    %37 = vector.broadcast %cst_21 : f32 to vector<8x32xf32>
    %38 = arith.maximumf %36, %37 : vector<8x32xf32>
    %39 = arith.truncf %38 : vector<8x32xf32> to vector<8x32xbf16>
    %c0_22 = arith.constant 0 : index
    %c0_23 = arith.constant 0 : index
    %40 = vector.load %arg7[%c0_22, %c0_23] : memref<32x32xbf16, #tpu.memory_space<vmem>>, vector<32x32xbf16>
    %cst_24 = arith.constant dense<0.000000e+00> : vector<8x32xf32>
    %41 = tpu.matmul %39, %40, %cst_24 {dimension_numbers = #tpu.dot_dimension_numbers<[1], [0], [0], [1], [0, 0, 1, 1], [], []>} : vector<8x32xbf16>, vector<32x32xbf16>, vector<8x32xf32> -> vector<8x32xf32>
    %c0_25 = arith.constant 0 : index
    %c0_26 = arith.constant 0 : index
    %42 = vector.load %arg8[%c0_25, %c0_26] : memref<1x32xf32, #tpu.memory_space<vmem>>, vector<1x32xf32>
    %43 = vector.broadcast %42 : vector<1x32xf32> to vector<8x32xf32>
    %44 = arith.addf %41, %43 : vector<8x32xf32>
    %c0_27 = arith.constant 0 : index
    %c0_28 = arith.constant 0 : index
    %45 = vector.load %arg9[%c0_27, %c0_28] : memref<1x32xf32, #tpu.memory_space<vmem>>, vector<1x32xf32>
    %c0_29 = arith.constant 0 : index
    %c0_30 = arith.constant 0 : index
    %46 = vector.load %arg10[%c0_29, %c0_30] : memref<1x32xf32, #tpu.memory_space<vmem>>, vector<1x32xf32>
    %cst_31 = arith.constant dense<0.000000e+00> : vector<8xf32>
    %47 = vector.multi_reduction <add>, %44, %cst_31 [1] : vector<8x32xf32> to vector<8xf32>
    %48 = vector.shape_cast %47 : vector<8xf32> to vector<8x1xf32>
    %cst_32 = arith.constant 3.200000e+01 : f32
    %49 = vector.broadcast %cst_32 : f32 to vector<8x1xf32>
    %50 = arith.divf %48, %49 : vector<8x1xf32>
    %51 = vector.broadcast %50 : vector<8x1xf32> to vector<8x32xf32>
    %52 = arith.subf %44, %51 : vector<8x32xf32>
    %53 = arith.mulf %52, %52 : vector<8x32xf32>
    %cst_33 = arith.constant dense<0.000000e+00> : vector<8xf32>
    %54 = vector.multi_reduction <add>, %53, %cst_33 [1] : vector<8x32xf32> to vector<8xf32>
    %55 = vector.shape_cast %54 : vector<8xf32> to vector<8x1xf32>
    %cst_34 = arith.constant 3.200000e+01 : f32
    %56 = vector.broadcast %cst_34 : f32 to vector<8x1xf32>
    %57 = arith.divf %55, %56 : vector<8x1xf32>
    %58 = vector.broadcast %50 : vector<8x1xf32> to vector<8x32xf32>
    %59 = arith.subf %44, %58 : vector<8x32xf32>
    %cst_35 = arith.constant 9.99999974E-6 : f32
    %60 = vector.broadcast %cst_35 : f32 to vector<8x1xf32>
    %61 = arith.addf %57, %60 : vector<8x1xf32>
    %62 = math.rsqrt %61 : vector<8x1xf32>
    %63 = vector.broadcast %62 : vector<8x1xf32> to vector<8x32xf32>
    %64 = arith.mulf %59, %63 : vector<8x32xf32>
    %65 = vector.broadcast %45 : vector<1x32xf32> to vector<8x32xf32>
    %66 = arith.mulf %64, %65 : vector<8x32xf32>
    %67 = vector.broadcast %46 : vector<1x32xf32> to vector<8x32xf32>
    %68 = arith.addf %66, %67 : vector<8x32xf32>
    %cst_36 = arith.constant 0.000000e+00 : f32
    %69 = vector.broadcast %cst_36 : f32 to vector<8x32xf32>
    %70 = arith.maximumf %68, %69 : vector<8x32xf32>
    %71 = arith.truncf %70 : vector<8x32xf32> to vector<8x32xbf16>
    %c0_37 = arith.constant 0 : index
    %c0_38 = arith.constant 0 : index
    %72 = vector.load %arg11[%c0_37, %c0_38] : memref<32x128xbf16, #tpu.memory_space<vmem>>, vector<32x128xbf16>
    %cst_39 = arith.constant dense<0.000000e+00> : vector<8x128xf32>
    %73 = tpu.matmul %71, %72, %cst_39 {dimension_numbers = #tpu.dot_dimension_numbers<[1], [0], [0], [1], [0, 0, 1, 1], [], []>} : vector<8x32xbf16>, vector<32x128xbf16>, vector<8x128xf32> -> vector<8x128xf32>
    %c0_40 = arith.constant 0 : index
    %c0_41 = arith.constant 0 : index
    %74 = vector.load %arg12[%c0_40, %c0_41] : memref<1x128xf32, #tpu.memory_space<vmem>>, vector<1x128xf32>
    %75 = vector.broadcast %74 : vector<1x128xf32> to vector<8x128xf32>
    %76 = arith.addf %73, %75 : vector<8x128xf32>
    %c0_42 = arith.constant 0 : index
    %c0_43 = arith.constant 0 : index
    %77 = vector.load %arg13[%c0_42, %c0_43] : memref<8x128xf32, #tpu.memory_space<vmem>>, vector<8x128xf32>
    tpu.vector_store %arg13[%c0_42, %c0_43], %76 {strides = array<i32>} : memref<8x128xf32, #tpu.memory_space<vmem>>, vector<8x128xf32>,
    return
  }
  func.func @transform_0(%arg0: i32) -> (i32, i32) {
    %c0_i32 = arith.constant 0 : i32
    %c0_i32_0 = arith.constant 0 : i32
    return %arg0, %c0_i32 : i32, i32
  }
  func.func @transform_1(%arg0: i32) -> (i32, i32) {
    %c0_i32 = arith.constant 0 : i32
    %c0_i32_0 = arith.constant 0 : i32
    return %arg0, %c0_i32 : i32, i32
  }
  func.func @transform_2(%arg0: i32) -> (i32, i32) {
    %c0_i32 = arith.constant 0 : i32
    %c0_i32_0 = arith.constant 0 : i32
    %c0_i32_1 = arith.constant 0 : i32
    return %c0_i32, %c0_i32_0 : i32, i32
  }
  func.func @transform_3(%arg0: i32) -> (i32, i32) {
    %c0_i32 = arith.constant 0 : i32
    %c0_i32_0 = arith.constant 0 : i32
    %c0_i32_1 = arith.constant 0 : i32
    return %c0_i32, %c0_i32_0 : i32, i32
  }
  func.func @transform_4(%arg0: i32) -> (i32, i32) {
    %c0_i32 = arith.constant 0 : i32
    %c0_i32_0 = arith.constant 0 : i32
    %c0_i32_1 = arith.constant 0 : i32
    return %c0_i32, %c0_i32_0 : i32, i32
  }
  func.func @transform_5(%arg0: i32) -> (i32, i32) {
    %c0_i32 = arith.constant 0 : i32
    %c0_i32_0 = arith.constant 0 : i32
    %c0_i32_1 = arith.constant 0 : i32
    return %c0_i32, %c0_i32_0 : i32, i32
  }
  func.func @transform_6(%arg0: i32) -> (i32, i32) {
    %c0_i32 = arith.constant 0 : i32
    %c0_i32_0 = arith.constant 0 : i32
    %c0_i32_1 = arith.constant 0 : i32
    return %c0_i32, %c0_i32_0 : i32, i32
  }
  func.func @transform_7(%arg0: i32) -> (i32, i32) {
    %c0_i32 = arith.constant 0 : i32
    %c0_i32_0 = arith.constant 0 : i32
    %c0_i32_1 = arith.constant 0 : i32
    return %c0_i32, %c0_i32_0 : i32, i32
  }
  func.func @transform_8(%arg0: i32) -> (i32, i32) {
    %c0_i32 = arith.constant 0 : i32
    %c0_i32_0 = arith.constant 0 : i32
    %c0_i32_1 = arith.constant 0 : i32
    return %c0_i32, %c0_i32_0 : i32, i32
  }
  func.func @transform_9(%arg0: i32) -> (i32, i32) {
    %c0_i32 = arith.constant 0 : i32
    %c0_i32_0 = arith.constant 0 : i32
    %c0_i32_1 = arith.constant 0 : i32
    return %c0_i32, %c0_i32_0 : i32, i32
  }
  func.func @transform_10(%arg0: i32) -> (i32, i32) {
    %c0_i32 = arith.constant 0 : i32
    %c0_i32_0 = arith.constant 0 : i32
    %c0_i32_1 = arith.constant 0 : i32
    return %c0_i32, %c0_i32_0 : i32, i32
  }
  func.func @transform_11(%arg0: i32) -> (i32, i32) {
    %c0_i32 = arith.constant 0 : i32
    %c0_i32_0 = arith.constant 0 : i32
    %c0_i32_1 = arith.constant 0 : i32
    return %c0_i32, %c0_i32_0 : i32, i32
  }
  func.func @transform_12(%arg0: i32) -> (i32, i32) {
    %c0_i32 = arith.constant 0 : i32
    %c0_i32_0 = arith.constant 0 : i32
    return %arg0, %c0_i32 : i32, i32
  }
}

</mosaic_0001>

<bundles_post_ra>
// kernel: tpu_custom_call.1
= control target key start
LH: loop header
LB: loop body
LE: loop exit
PB: predicated region body
PF: predicated region fallthrough
CT: control target
= control target key end

     0   :  { %17 = vsyncpa [#allocation4], 0  ;;  %s827_s0 = inlined_call_operand.hbm [shape: bf16[8,8], index: 0, kind: input, shape index: {}]   ;;  %s828_s1 = inlined_call_operand.hbm [shape: bf16[8,8], index: 1, kind: input, shape index: {}]   ;;  %s829_s2 = inlined_call_operand.hbm [shape: bf16[16,32], index: 2, kind: input, shape index: {}]   ;;  %s830_s3 = inlined_call_operand.vmem [shape: f32[1,32], index: 3, kind: input, shape index: {}]   ;;  %s831_s4 = inlined_call_operand.vmem [shape: f32[1,32], index: 4, kind: input, shape index: {}]   ;;  %s832_s5 = inlined_call_operand.hbm [shape: f32[1,32], index: 5, kind: input, shape index: {}]   ;;  %s833_s6 = inlined_call_operand.hbm [shape: bf16[32,32], index: 6, kind: input, shape index: {}]   ;;  %s834_s7 = inlined_call_operand.hbm [shape: f32[1,32], index: 7, kind: input, shape index: {}]   ;;  %s835_s8 = inlined_call_operand.hbm [shape: f32[1,32], index: 8, kind: input, shape index: {}]   ;;  %s836_s9 = inlined_call_operand.hbm [shape: f32[1,32], index: 9, kind: input, shape index: {}]   ;;  %s837_s10 = inlined_call_operand.vmem [shape: bf16[32,128], index: 10, kind: input, shape index: {}]   ;;  %s838_s11 = inlined_call_operand.vmem [shape: f32[1,128], index: 11, kind: input, shape index: {}]   ;;  %s839_s12 = inlined_call_operand.hbm [shape: f32[8,128], index: 12, kind: output, shape index: {}]  }
   0x1   :  { %18 = vsyncpa [#allocation7], 0 }
   0x2   :  { %19 = vsyncpa [#allocation10], 0 }
   0x3   :  { %20 = vsyncpa [#allocation13], 0 }
   0x4   :  { %21 = vsyncpa [#allocation16], 0 }
   0x5   :  { %22 = vsyncpa [#allocation5], 0  ;;  %s689_s21 = smov [#allocation6]   ;;  %s690_s23 = smov [#allocation9]  }
   0x6   :  { %s39_s22 = sshll.u32 %s689_s21, 4  ;;  %s65_s24 = sshll.u32 %s690_s23, 4  ;;  %s40_s22 = int_to_ptr.vmem [resolvable:$true] %s39_s22  ;;  %s66_s24 = int_to_ptr.vmem [resolvable:$true] %s65_s24 }
   0x7   :  { %s505_s25 = scalar_lea.vmem %s40_s22, 64  ;;  %p510_p1 = scmp.lt.s32.totalorder %s40_s22, %s40_s22 }
   0x8   :  { %p506_p0 = scmp.ne.s32.totalorder %s40_s22, %s505_s25  ;;  %p511_p2 = scmp.lt.s32.totalorder %s505_s25, %s505_s25 }
   0xa   :  { %p512_p3 = por %p511_p2, %p510_p1 }
   0xc   :  { %p513_p4 = pnand %p512_p3, %p506_p0 }
   0xe   :  { %516 = shalt.err (!%p513_p4)
}
   0xf   :  { %42 = dma.hbm_to_vmem [thread:$0]  %s828_s1, 64, %s40_s22, [#allocation7]  }
  0x10   :  { %s525_s28 = scalar_lea.vmem %s66_s24, 16  ;;  %s529_s29 = scalar_lea.vmem %s66_s24, 32 }
  0x11   :  { %p526_p5 = scmp.ne.s32.totalorder %s66_s24, %s525_s28  ;;  %p530_p6 = scmp.lt.s32.totalorder %s66_s24, %s66_s24 }
  0x12   :  { %p531_p7 = scmp.lt.s32.totalorder %s529_s29, %s525_s28 }
  0x14   :  { %p532_p8 = por %p531_p7, %p530_p6 }
  0x16   :  { %p533_p9 = pnand %p532_p8, %p526_p5 }
  0x18   :  { %536 = shalt.err (!%p533_p9)
}
  0x19   :  { %68 = dma.hbm_to_vmem [thread:$0]  %s832_s5, 16, %s66_s24, [#allocation10]  }
  0x1a   :  { %s691_s14 = smov [#allocation12]   ;;  %s692_s16 = smov [#allocation3]  }
  0x1b   :  { %s87_s15 = sshll.u32 %s691_s14, 4  ;;  %s29_s17 = sshll.u32 %s692_s16, 4  ;;  %s88_s15 = int_to_ptr.vmem [resolvable:$true] %s87_s15  ;;  %s30_s17 = int_to_ptr.vmem [resolvable:$true] %s29_s17 }
  0x1c   :  { %s545_s18 = scalar_lea.vmem %s88_s15, 16  ;;  %s549_s1 = scalar_lea.vmem %s88_s15, 32 }
  0x1d   :  { %p546_p10 = scmp.ne.s32.totalorder %s88_s15, %s545_s18  ;;  %p550_p11 = scmp.lt.s32.totalorder %s88_s15, %s88_s15 }
  0x1e   :  { %p551_p12 = scmp.lt.s32.totalorder %s549_s1, %s545_s18 }
  0x20   :  { %p552_p13 = por %p551_p12, %p550_p11 }
  0x22   :  { %p553_p0 = pnand %p552_p13, %p546_p10 }
  0x24   :  { %556 = shalt.err (!%p553_p0)
}
  0x25   :  { %90 = dma.hbm_to_vmem [thread:$0]  %s834_s7, 16, %s88_s15, [#allocation13]  }
  0x26   :  { %s565_s21 = scalar_lea.vmem %s30_s17, 64  ;;  %p570_p2 = scmp.lt.s32.totalorder %s30_s17, %s30_s17 }
  0x27   :  { %p566_p1 = scmp.ne.s32.totalorder %s30_s17, %s565_s21  ;;  %p571_p3 = scmp.lt.s32.totalorder %s565_s21, %s565_s21 }
  0x29   :  { %p572_p4 = por %p571_p3, %p570_p2 }
  0x2b   :  { %p573_p5 = pnand %p572_p4, %p566_p1 }
  0x2d   :  { %576 = shalt.err (!%p573_p5)
}
  0x2e   :  { %32 = dma.hbm_to_vmem [thread:$0]  %s827_s0, 64, %s30_s17, [#allocation4]  }
  0x2f   :  { %s693_s23 = smov [#allocation8]  }
  0x30   :  { %s48_s24 = sshll.u32 %s693_s23, 4  ;;  %s49_s24 = int_to_ptr.vmem [resolvable:$true] %s48_s24 }
  0x31   :  { %s585_s25 = scalar_lea.vmem %s49_s24, 128  ;;  %p590_p7 = scmp.lt.s32.totalorder %s49_s24, %s49_s24 }
  0x32   :  { %p586_p6 = scmp.ne.s32.totalorder %s49_s24, %s585_s25  ;;  %p591_p8 = scmp.lt.s32.totalorder %s585_s25, %s585_s25 }
  0x34   :  { %p592_p9 = por %p591_p8, %p590_p7 }
  0x36   :  { %p593_p10 = pnand %p592_p9, %p586_p6 }
  0x38   :  { %596 = shalt.err (!%p593_p10)
}
  0x39   :  { %s694_s7 = smov 64   ;;  %s695_s26 = smov 4  }
  0x3a   :  { %54 = dma.hbm_to_vmem [thread:$0]  %s829_s2, 128, %s49_s24, [#allocation7], %s694_s7, %s694_s7, %s695_s26  }
  0x3b   :  { %s696_s29 = smov [#allocation11]   ;;  %s697_s0 = smov [#allocation14]  }
  0x3c   :  { %s74_s30 = sshll.u32 %s696_s29, 4  ;;  %s97_s13 = sshll.u32 %s697_s0, 4  ;;  %s75_s30 = int_to_ptr.vmem [resolvable:$true] %s74_s30  ;;  %s98_s13 = int_to_ptr.vmem [resolvable:$true] %s97_s13 }
  0x3d   :  { %s605_s14 = scalar_lea.vmem %s75_s30, 256  ;;  %p610_p12 = scmp.lt.s32.totalorder %s75_s30, %s75_s30 }
  0x3e   :  { %p606_p11 = scmp.ne.s32.totalorder %s75_s30, %s605_s14  ;;  %p611_p13 = scmp.lt.s32.totalorder %s605_s14, %s605_s14 }
  0x40   :  { %p612_p0 = por %p611_p13, %p610_p12 }
  0x42   :  { %p613_p1 = pnand %p612_p0, %p606_p11 }
  0x44   :  { %616 = shalt.err (!%p613_p1)
}
  0x45   :  { %80 = dma.hbm_to_vmem [thread:$0]  %s833_s6, 256, %s75_s30, [#allocation10], %s694_s7, %s694_s7, %s695_s26  }
  0x46   :  { %s625_s17 = scalar_lea.vmem %s98_s13, 16  ;;  %s629_s2 = scalar_lea.vmem %s98_s13, 32 }
  0x47   :  { %p626_p2 = scmp.ne.s32.totalorder %s98_s13, %s625_s17  ;;  %p630_p3 = scmp.lt.s32.totalorder %s98_s13, %s98_s13 }
  0x48   :  { %p631_p4 = scmp.lt.s32.totalorder %s629_s2, %s625_s17 }
  0x4a   :  { %p632_p5 = por %p631_p4, %p630_p3 }
  0x4c   :  { %p633_p6 = pnand %p632_p5, %p626_p2 }
  0x4e   :  { %636 = shalt.err (!%p633_p6)
}
  0x4f   :  { %100 = dma.hbm_to_vmem [thread:$0]  %s835_s8, 16, %s98_s13, [#allocation13]  }
  0x50   :  { %s698_s19 = smov [#allocation15]  }
  0x51   :  { %s107_s20 = sshll.u32 %s698_s19, 4  ;;  %s108_s20 = int_to_ptr.vmem [resolvable:$true] %s107_s20 }
  0x52   :  { %s645_s21 = scalar_lea.vmem %s108_s20, 16  ;;  %s649_s5 = scalar_lea.vmem %s108_s20, 32 }
  0x53   :  { %p646_p7 = scmp.ne.s32.totalorder %s108_s20, %s645_s21  ;;  %p650_p8 = scmp.lt.s32.totalorder %s108_s20, %s108_s20 }
  0x54   :  { %p651_p9 = scmp.lt.s32.totalorder %s649_s5, %s645_s21 }
  0x56   :  { %p652_p10 = por %p651_p9, %p650_p8 }
  0x58   :  { %p653_p11 = pnand %p652_p10, %p646_p7 }
  0x5a   :  { %656 = shalt.err (!%p653_p11)
}
  0x5b   :  { %110 = dma.hbm_to_vmem [thread:$0]  %s836_s9, 16, %s108_s20, [#allocation16]  }
  0x5c   :  { %677 = dma.done.wait [#allocation4], 64  }
  0x5d   :  { %678 = vsyncadd [#allocation4], 4294967232 }
  0x5e   :  { %679 = dma.done.wait [#allocation7], 192  }
  0x5f   :  { %680 = vsyncadd [#allocation7], 4294967104 }
  0x60   :  { %681 = dma.done.wait [#allocation10], 272  }
  0x61   :  { %682 = vsyncadd [#allocation10], 4294967024 }
  0x62   :  { %683 = dma.done.wait [#allocation13], 32  }
  0x63   :  { %684 = vsyncadd [#allocation13], 4294967264 }
  0x64   :  { %685 = dma.done.wait [#allocation16], 16  }
  0x65   :  { %686 = vsyncadd [#allocation16], 4294967280  ;;  %v699_v0 = vmov 0.0   ;;  %vm700_vm0 = vmmov 0   ;;  %vm142_vm1 = vcmask 64512   ;;  %v488_v5 = vld [vmem:[#allocation8] sm:$0xff]  }
  0x66   :  { %452 = vmatprep.subr.bf16.mxu0 %v699_v0  ;;  %458 = vmatprep.subr.bf16.mxu1 %v699_v0  ;;  %v144_v1 = vld [vmem:[#allocation6] sm:$0xf]  ;;  %v140_v2 = vld [vmem:[#allocation3] sm:$0xf]  ;;  %s701_s8 = smov 8   ;;  %vm150_vm2 = vcmask 130112  }
  0x67   :  { %454 = vmatprep.mubr.msk.bf16.mxu0 %vm700_vm0, %v699_v0  ;;  %462 = vmatprep.mubr.msk.bf16.mxu1 %vm700_vm0, %v699_v0  ;;  %v145_v3 = vunpack.c.l.bf16 %v144_v1  ;;  %v141_v4 = vunpack.c.l.bf16 %v140_v2  ;;  %vm169_vm3 = vcmask 130048   ;;  %v429_v9 = vld [vmem:[%s830_s3] ss:$0 sm:$0xff]  ;;  %vm215_vm4 = vcmask 261120   ;;  %v489_v21 = vld [vmem:[#allocation11 + $0x8] sm:$0xff]   ;;  %v490_v22 = vld [vmem:[#allocation11] sm:$0xff]  }
  0x68   :  { %453 = vmatpush3.bf16.msra.mxu0 %v488_v5  ;;  %459 = vmatpush3.bf16.msra.mxu1 %v489_v21  ;;  %v432_v27 = vld [vmem:[%s831_s4] ss:$0 sm:$0xff]  ;;  %v433_v29 = vld [vmem:[#allocation9] ss:$0 sm:$0xff]  ;;  %v434_v34 = vld [vmem:[#allocation12] ss:$0 sm:$0xff] }
  0x69   :  { %147 = vrot.lane.b32.xlu0 %v145_v3, %s701_s8  ;;  %143 = vst.msk [vmem:[#allocation2] sm:$0xff] %vm142_vm1, %v141_v4  ;;  %466 = vmatprep.subr.bf16.mxu0 %v699_v0  ;;  %v491_v46 = vld [vmem:[%s837_s10 + $0x8] sm:$0xff]   ;;  %v492_v47 = vld [vmem:[%s837_s10] sm:$0xff]   ;;  %v438_v52 = vld [vmem:[#allocation14] ss:$0 sm:$0xff]  ;;  %s702_s10 = smov [#allocation17]  }
  0x6a   :  { %460 = vmatprep.subr.bf16.mxu1 %v699_v0  ;;  %v439_v54 = vld [vmem:[#allocation15] ss:$0 sm:$0xff]  ;;  %v440_v59 = vld [vmem:[%s838_s11] ss:$0 sm:$0xff]  ;;  %s416_s29 = sshll.u32 %s702_s10, 4  ;;  %s417_s29 = int_to_ptr.vmem [resolvable:$true] %s416_s29 }
  0x6b   :  { %s657_s30 = scalar_lea.vmem %s417_s29, 128  ;;  %p662_p13 = scmp.lt.s32.totalorder %s417_s29, %s417_s29 }
  0x6c   :  { %461 = vmatpush3.bf16.msra.mxu1 %v490_v22  ;;  %p658_p12 = scmp.ne.s32.totalorder %s417_s29, %s657_s30  ;;  %p663_p0 = scmp.lt.s32.totalorder %s657_s30, %s657_s30 }
  0x6e   :  { %p664_p1 = por %p663_p0, %p662_p13 }
  0x70   :  { %p665_p2 = pnand %p664_p1, %p658_p12 }
  0xdb   :  { %v148_v6 = vpop.permute.xlu0 %147 }
  0xdc   :  { %151 = vst.msk [vmem:[#allocation2] sm:$0xff] %vm150_vm2, %v148_v6 }
  0xe3   :  { %v152_v7 = vld [vmem:[#allocation2] sm:$0xff] }
  0xe4   :  { %v153_v8 = vpack.c.bf16 %v152_v7, %v152_v7 }
  0xe6   :  { %455 = vmatmul.mubr.msk.bf16.vlgmr.msra.gmra.mxu0 %vm169_vm3, %v153_v8 }
  0xe7   :  { %470 = vmatprep.mubr.msk.bf16.mxu0 %vm700_vm0, %v699_v0  ;;  %467 = vmatpush3.bf16.msra.mxu0 %v491_v46 }
  0xe8   :  { %468 = vmatprep.subr.bf16.mxu0 %v699_v0 }
  0xeb   :  { %469 = vmatpush3.bf16.msra.mxu0 %v492_v47 }
 0x1a6   :  { %v207_v10 = vpop.f32.mrf.mxu0 }
 0x1a7   :  { %v208_v11 = vadd.f32 %v429_v9, %v207_v10 }
 0x1a8   :  { %v456_v12 = vpop.f32.mrf.mxu0 }
 0x1a9   :  { %v216_v13 = vsel %vm215_vm4, %v208_v11, 0.0 }
 0x1aa   :  { %217 = vadd.xlane.f32.xlu0 %v216_v13  ;;  %v210_v14 = vpop.f32.mrf.mxu0 }
 0x1ac   :  { %v457_v15 = vpop.f32.mrf.mxu0 }
 0x233   :  { %v218_v16 = vpop.xlane.xlu0 %217 }
 0x234   :  { %v220_v17 = vmul.f32 0.03125, %v218_v16 }
 0x236   :  { %v221_v18 = vsub.f32 %v208_v11, %v220_v17 }
 0x238   :  { %v222_v19 = vmul.f32 %v221_v18, %v221_v18 }
 0x23a   :  { %v223_v20 = vsel %vm215_vm4, %v222_v19, 0.0 }
 0x23b   :  { %224 = vadd.xlane.f32.xlu1 %v223_v20 }
 0x2c4   :  { %v225_v23 = vpop.xlane.xlu1 %224 }
 0x2c5   :  { %v226_v24 = vmul.f32 0.03125, %v225_v23 }
 0x2c7   :  { %v227_v25 = vadd.f32 1e-05, %v226_v24 }
 0x2c9   :  { %493 = vrsqrt.f32 %v227_v25 }
 0x2d6   :  { %v494_v26 = vpop.eup %493 }
 0x2d7   :  { %v229_v28 = vmul.f32 %v494_v26, %v221_v18 }
 0x2d9   :  { %v236_v30 = vmul.f32 %v432_v27, %v229_v28 }
 0x2db   :  { %v243_v31 = vadd.f32 %v433_v29, %v236_v30 }
 0x2dd   :  { %v244_v32 = vmax.f32 %v243_v31, 0.0 }
 0x2df   :  { %v245_v33 = vpack.c.bf16 %v244_v32, %v244_v32 }
 0x2e1   :  { %463 = vmatmul.mubr.msk.bf16.vlgmr.msra.gmra.mxu1 %vm215_vm4, %v245_v33 }
 0x3a1   :  { %v306_v35 = vpop.f32.mrf.mxu1 }
 0x3a2   :  { %v307_v36 = vadd.f32 %v434_v34, %v306_v35 }
 0x3a3   :  { %v464_v37 = vpop.f32.mrf.mxu1 }
 0x3a4   :  { %v314_v38 = vsel %vm215_vm4, %v307_v36, 0.0 }
 0x3a5   :  { %315 = vadd.xlane.f32.xlu1 %v314_v38  ;;  %v309_v39 = vpop.f32.mrf.mxu1 }
 0x3a7   :  { %v465_v40 = vpop.f32.mrf.mxu1 }
 0x42e   :  { %v316_v41 = vpop.xlane.xlu1 %315 }
 0x42f   :  { %v317_v42 = vmul.f32 0.03125, %v316_v41 }
 0x431   :  { %v318_v43 = vsub.f32 %v307_v36, %v317_v42 }
 0x433   :  { %v319_v44 = vmul.f32 %v318_v43, %v318_v43 }
 0x435   :  { %v320_v45 = vsel %vm215_vm4, %v319_v44, 0.0 }
 0x436   :  { %321 = vadd.xlane.f32.xlu1 %v320_v45 }
 0x4bf   :  { %v322_v48 = vpop.xlane.xlu1 %321 }
 0x4c0   :  { %v323_v49 = vmul.f32 0.03125, %v322_v48 }
 0x4c2   :  { %v324_v50 = vadd.f32 1e-05, %v323_v49 }
 0x4c4   :  { %495 = vrsqrt.f32 %v324_v50 }
 0x4d1   :  { %v496_v51 = vpop.eup %495 }
 0x4d2   :  { %v326_v53 = vmul.f32 %v496_v51, %v318_v43 }
 0x4d4   :  { %v333_v55 = vmul.f32 %v438_v52, %v326_v53 }
 0x4d6   :  { %v340_v56 = vadd.f32 %v439_v54, %v333_v55 }
 0x4d8   :  { %v341_v57 = vmax.f32 %v340_v56, 0.0 }
 0x4da   :  { %v342_v58 = vpack.c.bf16 %v341_v57, %v341_v57 }
 0x4dc   :  { %471 = vmatmul.mubr.msk.bf16.vlgmr.msra.gmra.mxu0 %vm215_vm4, %v342_v58 }
 0x59c   :  { %v403_v60 = vpop.f32.mrf.mxu0 }
 0x59d   :  { %v404_v61 = vadd.f32 %v440_v59, %v403_v60 }
 0x59e   :  { %v472_v62 = vpop.f32.mrf.mxu0 }
 0x59f   :  { %409 = vst [vmem:[#allocation17] sm:$0xff] %v404_v61 }
 0x5a0   :  { %v406_v63 = vpop.f32.mrf.mxu0 }
 0x5a1   :  { %668 = shalt.err (!%p665_p2)
}
 0x5a2   :  { %419 = dma.vmem_to_hbm [thread:$0]  %s417_s29, 128, %s839_s12, [#allocation5]   ;;  %v473_v0 = vpop.f32.mrf.mxu0 }
 0x5a3   :  { %687 = dma.done.wait [#allocation5], 128  }
 0x5a4   :  { %688 = vsyncadd [#allocation5], 4294967168 }
 0x5a5   :  { %423 = vsyncpa [#allocation4], 1 }
 0x5a6   :  { %424 = vsyncpa [#allocation7], 1 }
 0x5a7   :  { %425 = vsyncpa [#allocation10], 1 }
 0x5a8   :  { %426 = vsyncpa [#allocation13], 1 }
 0x5a9   :  { %427 = vsyncpa [#allocation16], 1 }
 0x5aa   :  { %428 = vsyncpa [#allocation5], 1 }

// kernel: tpu_custom_call.1
= control target key start
LH: loop header
LB: loop body
LE: loop exit
PB: predicated region body
PF: predicated region fallthrough
CT: control target
= control target key end

     0   :  { %17 = vsyncpa [#allocation4], 0  ;;  %s827_s0 = inlined_call_operand.hbm [shape: bf16[8,8], index: 0, kind: input, shape index: {}]   ;;  %s828_s1 = inlined_call_operand.hbm [shape: bf16[8,8], index: 1, kind: input, shape index: {}]   ;;  %s829_s2 = inlined_call_operand.hbm [shape: bf16[16,32], index: 2, kind: input, shape index: {}]   ;;  %s830_s3 = inlined_call_operand.vmem [shape: f32[1,32], index: 3, kind: input, shape index: {}]   ;;  %s831_s4 = inlined_call_operand.vmem [shape: f32[1,32], index: 4, kind: input, shape index: {}]   ;;  %s832_s5 = inlined_call_operand.hbm [shape: f32[1,32], index: 5, kind: input, shape index: {}]   ;;  %s833_s6 = inlined_call_operand.hbm [shape: bf16[32,32], index: 6, kind: input, shape index: {}]   ;;  %s834_s7 = inlined_call_operand.hbm [shape: f32[1,32], index: 7, kind: input, shape index: {}]   ;;  %s835_s8 = inlined_call_operand.hbm [shape: f32[1,32], index: 8, kind: input, shape index: {}]   ;;  %s836_s9 = inlined_call_operand.hbm [shape: f32[1,32], index: 9, kind: input, shape index: {}]   ;;  %s837_s10 = inlined_call_operand.vmem [shape: bf16[32,128], index: 10, kind: input, shape index: {}]   ;;  %s838_s11 = inlined_call_operand.vmem [shape: f32[1,128], index: 11, kind: input, shape index: {}]   ;;  %s839_s12 = inlined_call_operand.hbm [shape: f32[8,128], index: 12, kind: output, shape index: {}]  }
   0x1   :  { %18 = vsyncpa [#allocation7], 0 }
   0x2   :  { %19 = vsyncpa [#allocation10], 0 }
   0x3   :  { %20 = vsyncpa [#allocation13], 0 }
   0x4   :  { %21 = vsyncpa [#allocation16], 0 }
   0x5   :  { %22 = vsyncpa [#allocation5], 0  ;;  %s689_s21 = smov [#allocation6]   ;;  %s690_s23 = smov [#allocation9]  }
   0x6   :  { %s39_s22 = sshll.u32 %s689_s21, 4  ;;  %s65_s24 = sshll.u32 %s690_s23, 4  ;;  %s40_s22 = int_to_ptr.vmem [resolvable:$true] %s39_s22  ;;  %s66_s24 = int_to_ptr.vmem [resolvable:$true] %s65_s24 }
   0x7   :  { %s505_s25 = scalar_lea.vmem %s40_s22, 64  ;;  %p510_p1 = scmp.lt.s32.totalorder %s40_s22, %s40_s22 }
   0x8   :  { %p506_p0 = scmp.ne.s32.totalorder %s40_s22, %s505_s25  ;;  %p511_p2 = scmp.lt.s32.totalorder %s505_s25, %s505_s25 }
   0xa   :  { %p512_p3 = por %p511_p2, %p510_p1 }
   0xc   :  { %p513_p4 = pnand %p512_p3, %p506_p0 }
   0xe   :  { %516 = shalt.err (!%p513_p4)
}
   0xf   :  { %42 = dma.hbm_to_vmem [thread:$0]  %s828_s1, 64, %s40_s22, [#allocation7]  }
  0x10   :  { %s525_s28 = scalar_lea.vmem %s66_s24, 16  ;;  %s529_s29 = scalar_lea.vmem %s66_s24, 32 }
  0x11   :  { %p526_p5 = scmp.ne.s32.totalorder %s66_s24, %s525_s28  ;;  %p530_p6 = scmp.lt.s32.totalorder %s66_s24, %s66_s24 }
  0x12   :  { %p531_p7 = scmp.lt.s32.totalorder %s529_s29, %s525_s28 }
  0x14   :  { %p532_p8 = por %p531_p7, %p530_p6 }
  0x16   :  { %p533_p9 = pnand %p532_p8, %p526_p5 }
  0x18   :  { %536 = shalt.err (!%p533_p9)
}
  0x19   :  { %68 = dma.hbm_to_vmem [thread:$0]  %s832_s5, 16, %s66_s24, [#allocation10]  }
  0x1a   :  { %s691_s14 = smov [#allocation12]   ;;  %s692_s16 = smov [#allocation3]  }
  0x1b   :  { %s87_s15 = sshll.u32 %s691_s14, 4  ;;  %s29_s17 = sshll.u32 %s692_s16, 4  ;;  %s88_s15 = int_to_ptr.vmem [resolvable:$true] %s87_s15  ;;  %s30_s17 = int_to_ptr.vmem [resolvable:$true] %s29_s17 }
  0x1c   :  { %s545_s18 = scalar_lea.vmem %s88_s15, 16  ;;  %s549_s1 = scalar_lea.vmem %s88_s15, 32 }
  0x1d   :  { %p546_p10 = scmp.ne.s32.totalorder %s88_s15, %s545_s18  ;;  %p550_p11 = scmp.lt.s32.totalorder %s88_s15, %s88_s15 }
  0x1e   :  { %p551_p12 = scmp.lt.s32.totalorder %s549_s1, %s545_s18 }
  0x20   :  { %p552_p13 = por %p551_p12, %p550_p11 }
  0x22   :  { %p553_p0 = pnand %p552_p13, %p546_p10 }
  0x24   :  { %556 = shalt.err (!%p553_p0)
}
  0x25   :  { %90 = dma.hbm_to_vmem [thread:$0]  %s834_s7, 16, %s88_s15, [#allocation13]  }
  0x26   :  { %s565_s21 = scalar_lea.vmem %s30_s17, 64  ;;  %p570_p2 = scmp.lt.s32.totalorder %s30_s17, %s30_s17 }
  0x27   :  { %p566_p1 = scmp.ne.s32.totalorder %s30_s17, %s565_s21  ;;  %p571_p3 = scmp.lt.s32.totalorder %s565_s21, %s565_s21 }
  0x29   :  { %p572_p4 = por %p571_p3, %p570_p2 }
  0x2b   :  { %p573_p5 = pnand %p572_p4, %p566_p1 }
  0x2d   :  { %576 = shalt.err (!%p573_p5)
}
  0x2e   :  { %32 = dma.hbm_to_vmem [thread:$0]  %s827_s0, 64, %s30_s17, [#allocation4]  }
  0x2f   :  { %s693_s23 = smov [#allocation8]  }
  0x30   :  { %s48_s24 = sshll.u32 %s693_s23, 4  ;;  %s49_s24 = int_to_ptr.vmem [resolvable:$true] %s48_s24 }
  0x31   :  { %s585_s25 = scalar_lea.vmem %s49_s24, 128  ;;  %p590_p7 = scmp.lt.s32.totalorder %s49_s24, %s49_s24 }
  0x32   :  { %p586_p6 = scmp.ne.s32.totalorder %s49_s24, %s585_s25  ;;  %p591_p8 = scmp.lt.s32.totalorder %s585_s25, %s585_s25 }
  0x34   :  { %p592_p9 = por %p591_p8, %p590_p7 }
  0x36   :  { %p593_p10 = pnand %p592_p9, %p586_p6 }
  0x38   :  { %596 = shalt.err (!%p593_p10)
}
  0x39   :  { %s694_s7 = smov 64   ;;  %s695_s26 = smov 4  }
  0x3a   :  { %54 = dma.hbm_to_vmem [thread:$0]  %s829_s2, 128, %s49_s24, [#allocation7], %s694_s7, %s694_s7, %s695_s26  }
  0x3b   :  { %s696_s29 = smov [#allocation11]   ;;  %s697_s0 = smov [#allocation14]  }
  0x3c   :  { %s74_s30 = sshll.u32 %s696_s29, 4  ;;  %s97_s13 = sshll.u32 %s697_s0, 4  ;;  %s75_s30 = int_to_ptr.vmem [resolvable:$true] %s74_s30  ;;  %s98_s13 = int_to_ptr.vmem [resolvable:$true] %s97_s13 }
  0x3d   :  { %s605_s14 = scalar_lea.vmem %s75_s30, 256  ;;  %p610_p12 = scmp.lt.s32.totalorder %s75_s30, %s75_s30 }
  0x3e   :  { %p606_p11 = scmp.ne.s32.totalorder %s75_s30, %s605_s14  ;;  %p611_p13 = scmp.lt.s32.totalorder %s605_s14, %s605_s14 }
  0x40   :  { %p612_p0 = por %p611_p13, %p610_p12 }
  0x42   :  { %p613_p1 = pnand %p612_p0, %p606_p11 }
  0x44   :  { %616 = shalt.err (!%p613_p1)
}
  0x45   :  { %80 = dma.hbm_to_vmem [thread:$0]  %s833_s6, 256, %s75_s30, [#allocation10], %s694_s7, %s694_s7, %s695_s26  }
  0x46   :  { %s625_s17 = scalar_lea.vmem %s98_s13, 16  ;;  %s629_s2 = scalar_lea.vmem %s98_s13, 32 }
  0x47   :  { %p626_p2 = scmp.ne.s32.totalorder %s98_s13, %s625_s17  ;;  %p630_p3 = scmp.lt.s32.totalorder %s98_s13, %s98_s13 }
  0x48   :  { %p631_p4 = scmp.lt.s32.totalorder %s629_s2, %s625_s17 }
  0x4a   :  { %p632_p5 = por %p631_p4, %p630_p3 }
  0x4c   :  { %p633_p6 = pnand %p632_p5, %p626_p2 }
  0x4e   :  { %636 = shalt.err (!%p633_p6)
}
  0x4f   :  { %100 = dma.hbm_to_vmem [thread:$0]  %s835_s8, 16, %s98_s13, [#allocation13]  }
  0x50   :  { %s698_s19 = smov [#allocation15]  }
  0x51   :  { %s107_s20 = sshll.u32 %s698_s19, 4  ;;  %s108_s20 = int_to_ptr.vmem [resolvable:$true] %s107_s20 }
  0x52   :  { %s645_s21 = scalar_lea.vmem %s108_s20, 16  ;;  %s649_s5 = scalar_lea.vmem %s108_s20, 32 }
  0x53   :  { %p646_p7 = scmp.ne.s32.totalorder %s108_s20, %s645_s21  ;;  %p650_p8 = scmp.lt.s32.totalorder %s108_s20, %s108_s20 }
  0x54   :  { %p651_p9 = scmp.lt.s32.totalorder %s649_s5, %s645_s21 }
  0x56   :  { %p652_p10 = por %p651_p9, %p650_p8 }
  0x58   :  { %p653_p11 = pnand %p652_p10, %p646_p7 }
  0x5a   :  { %656 = shalt.err (!%p653_p11)
}
  0x5b   :  { %110 = dma.hbm_to_vmem [thread:$0]  %s836_s9, 16, %s108_s20, [#allocation16]  }
  0x5c   :  { %677 = dma.done.wait [#allocation4], 64  }
  0x5d   :  { %678 = vsyncadd [#allocation4], 4294967232 }
  0x5e   :  { %679 = dma.done.wait [#allocation7], 192  }
  0x5f   :  { %680 = vsyncadd [#allocation7], 4294967104 }
  0x60   :  { %681 = dma.done.wait [#allocation10], 272  }
  0x61   :  { %682 = vsyncadd [#allocation10], 4294967024 }
  0x62   :  { %683 = dma.done.wait [#allocation13], 32  }
  0x63   :  { %684 = vsyncadd [#allocation13], 4294967264 }
  0x64   :  { %685 = dma.done.wait [#allocation16], 16  }
  0x65   :  { %686 = vsyncadd [#allocation16], 4294967280  ;;  %v699_v0 = vmov 0.0   ;;  %vm700_vm0 = vmmov 0   ;;  %vm142_vm1 = vcmask 64512   ;;  %v488_v5 = vld [vmem:[#allocation8] sm:$0xff]  }
  0x66   :  { %452 = vmatprep.subr.bf16.mxu0 %v699_v0  ;;  %458 = vmatprep.subr.bf16.mxu1 %v699_v0  ;;  %v144_v1 = vld [vmem:[#allocation6] sm:$0xf]  ;;  %v140_v2 = vld [vmem:[#allocation3] sm:$0xf]  ;;  %s701_s8 = smov 8   ;;  %vm150_vm2 = vcmask 130112  }
  0x67   :  { %454 = vmatprep.mubr.msk.bf16.mxu0 %vm700_vm0, %v699_v0  ;;  %462 = vmatprep.mubr.msk.bf16.mxu1 %vm700_vm0, %v699_v0  ;;  %v145_v3 = vunpack.c.l.bf16 %v144_v1  ;;  %v141_v4 = vunpack.c.l.bf16 %v140_v2  ;;  %vm169_vm3 = vcmask 130048   ;;  %v429_v9 = vld [vmem:[%s830_s3] ss:$0 sm:$0xff]  ;;  %vm215_vm4 = vcmask 261120   ;;  %v489_v21 = vld [vmem:[#allocation11 + $0x8] sm:$0xff]   ;;  %v490_v22 = vld [vmem:[#allocation11] sm:$0xff]  }
  0x68   :  { %453 = vmatpush3.bf16.msra.mxu0 %v488_v5  ;;  %459 = vmatpush3.bf16.msra.mxu1 %v489_v21  ;;  %v432_v27 = vld [vmem:[%s831_s4] ss:$0 sm:$0xff]  ;;  %v433_v29 = vld [vmem:[#allocation9] ss:$0 sm:$0xff]  ;;  %v434_v34 = vld [vmem:[#allocation12] ss:$0 sm:$0xff] }
  0x69   :  { %147 = vrot.lane.b32.xlu0 %v145_v3, %s701_s8  ;;  %143 = vst.msk [vmem:[#allocation2] sm:$0xff] %vm142_vm1, %v141_v4  ;;  %466 = vmatprep.subr.bf16.mxu0 %v699_v0  ;;  %v491_v46 = vld [vmem:[%s837_s10 + $0x8] sm:$0xff]   ;;  %v492_v47 = vld [vmem:[%s837_s10] sm:$0xff]   ;;  %v438_v52 = vld [vmem:[#allocation14] ss:$0 sm:$0xff]  ;;  %s702_s10 = smov [#allocation17]  }
  0x6a   :  { %460 = vmatprep.subr.bf16.mxu1 %v699_v0  ;;  %v439_v54 = vld [vmem:[#allocation15] ss:$0 sm:$0xff]  ;;  %v440_v59 = vld [vmem:[%s838_s11] ss:$0 sm:$0xff]  ;;  %s416_s29 = sshll.u32 %s702_s10, 4  ;;  %s417_s29 = int_to_ptr.vmem [resolvable:$true] %s416_s29 }
  0x6b   :  { %s657_s30 = scalar_lea.vmem %s417_s29, 128  ;;  %p662_p13 = scmp.lt.s32.totalorder %s417_s29, %s417_s29 }
  0x6c   :  { %461 = vmatpush3.bf16.msra.mxu1 %v490_v22  ;;  %p658_p12 = scmp.ne.s32.totalorder %s417_s29, %s657_s30  ;;  %p663_p0 = scmp.lt.s32.totalorder %s657_s30, %s657_s30 }
  0x6e   :  { %p664_p1 = por %p663_p0, %p662_p13 }
  0x70   :  { %p665_p2 = pnand %p664_p1, %p658_p12 }
  0xdb   :  { %v148_v6 = vpop.permute.xlu0 %147 }
  0xdc   :  { %151 = vst.msk [vmem:[#allocation2] sm:$0xff] %vm150_vm2, %v148_v6 }
  0xe3   :  { %v152_v7 = vld [vmem:[#allocation2] sm:$0xff] }
  0xe4   :  { %v153_v8 = vpack.c.bf16 %v152_v7, %v152_v7 }
  0xe6   :  { %455 = vmatmul.mubr.msk.bf16.vlgmr.msra.gmra.mxu0 %vm169_vm3, %v153_v8 }
  0xe7   :  { %470 = vmatprep.mubr.msk.bf16.mxu0 %vm700_vm0, %v699_v0  ;;  %467 = vmatpush3.bf16.msra.mxu0 %v491_v46 }
  0xe8   :  { %468 = vmatprep.subr.bf16.mxu0 %v699_v0 }
  0xeb   :  { %469 = vmatpush3.bf16.msra.mxu0 %v492_v47 }
 0x1a6   :  { %v207_v10 = vpop.f32.mrf.mxu0 }
 0x1a7   :  { %v208_v11 = vadd.f32 %v429_v9, %v207_v10 }
 0x1a8   :  { %v456_v12 = vpop.f32.mrf.mxu0 }
 0x1a9   :  { %v216_v13 = vsel %vm215_vm4, %v208_v11, 0.0 }
 0x1aa   :  { %217 = vadd.xlane.f32.xlu0 %v216_v13  ;;  %v210_v14 = vpop.f32.mrf.mxu0 }
 0x1ac   :  { %v457_v15 = vpop.f32.mrf.mxu0 }
 0x233   :  { %v218_v16 = vpop.xlane.xlu0 %217 }
 0x234   :  { %v220_v17 = vmul.f32 0.03125, %v218_v16 }
 0x236   :  { %v221_v18 = vsub.f32 %v208_v11, %v220_v17 }
 0x238   :  { %v222_v19 = vmul.f32 %v221_v18, %v221_v18 }
 0x23a   :  { %v223_v20 = vsel %vm215_vm4, %v222_v19, 0.0 }
 0x23b   :  { %224 = vadd.xlane.f32.xlu1 %v223_v20 }
 0x2c4   :  { %v225_v23 = vpop.xlane.xlu1 %224 }
 0x2c5   :  { %v226_v24 = vmul.f32 0.03125, %v225_v23 }
 0x2c7   :  { %v227_v25 = vadd.f32 1e-05, %v226_v24 }
 0x2c9   :  { %493 = vrsqrt.f32 %v227_v25 }
 0x2d6   :  { %v494_v26 = vpop.eup %493 }
 0x2d7   :  { %v229_v28 = vmul.f32 %v494_v26, %v221_v18 }
 0x2d9   :  { %v236_v30 = vmul.f32 %v432_v27, %v229_v28 }
 0x2db   :  { %v243_v31 = vadd.f32 %v433_v29, %v236_v30 }
 0x2dd   :  { %v244_v32 = vmax.f32 %v243_v31, 0.0 }
 0x2df   :  { %v245_v33 = vpack.c.bf16 %v244_v32, %v244_v32 }
 0x2e1   :  { %463 = vmatmul.mubr.msk.bf16.vlgmr.msra.gmra.mxu1 %vm215_vm4, %v245_v33 }
 0x3a1   :  { %v306_v35 = vpop.f32.mrf.mxu1 }
 0x3a2   :  { %v307_v36 = vadd.f32 %v434_v34, %v306_v35 }
 0x3a3   :  { %v464_v37 = vpop.f32.mrf.mxu1 }
 0x3a4   :  { %v314_v38 = vsel %vm215_vm4, %v307_v36, 0.0 }
 0x3a5   :  { %315 = vadd.xlane.f32.xlu1 %v314_v38  ;;  %v309_v39 = vpop.f32.mrf.mxu1 }
 0x3a7   :  { %v465_v40 = vpop.f32.mrf.mxu1 }
 0x42e   :  { %v316_v41 = vpop.xlane.xlu1 %315 }
 0x42f   :  { %v317_v42 = vmul.f32 0.03125, %v316_v41 }
 0x431   :  { %v318_v43 = vsub.f32 %v307_v36, %v317_v42 }
 0x433   :  { %v319_v44 = vmul.f32 %v318_v43, %v318_v43 }
 0x435   :  { %v320_v45 = vsel %vm215_vm4, %v319_v44, 0.0 }
 0x436   :  { %321 = vadd.xlane.f32.xlu1 %v320_v45 }
 0x4bf   :  { %v322_v48 = vpop.xlane.xlu1 %321 }
 0x4c0   :  { %v323_v49 = vmul.f32 0.03125, %v322_v48 }
 0x4c2   :  { %v324_v50 = vadd.f32 1e-05, %v323_v49 }
 0x4c4   :  { %495 = vrsqrt.f32 %v324_v50 }
 0x4d1   :  { %v496_v51 = vpop.eup %495 }
 0x4d2   :  { %v326_v53 = vmul.f32 %v496_v51, %v318_v43 }
 0x4d4   :  { %v333_v55 = vmul.f32 %v438_v52, %v326_v53 }
 0x4d6   :  { %v340_v56 = vadd.f32 %v439_v54, %v333_v55 }
 0x4d8   :  { %v341_v57 = vmax.f32 %v340_v56, 0.0 }
 0x4da   :  { %v342_v58 = vpack.c.bf16 %v341_v57, %v341_v57 }
 0x4dc   :  { %471 = vmatmul.mubr.msk.bf16.vlgmr.msra.gmra.mxu0 %vm215_vm4, %v342_v58 }
 0x59c   :  { %v403_v60 = vpop.f32.mrf.mxu0 }
 0x59d   :  { %v404_v61 = vadd.f32 %v440_v59, %v403_v60 }
 0x59e   :  { %v472_v62 = vpop.f32.mrf.mxu0 }
 0x59f   :  { %409 = vst [vmem:[#allocation17] sm:$0xff] %v404_v61 }
 0x5a0   :  { %v406_v63 = vpop.f32.mrf.mxu0 }
 0x5a1   :  { %668 = shalt.err (!%p665_p2)
}
 0x5a2   :  { %419 = dma.vmem_to_hbm [thread:$0]  %s417_s29, 128, %s839_s12, [#allocation5]   ;;  %v473_v0 = vpop.f32.mrf.mxu0 }
 0x5a3   :  { %687 = dma.done.wait [#allocation5], 128  }
 0x5a4   :  { %688 = vsyncadd [#allocation5], 4294967168 }
 0x5a5   :  { %423 = vsyncpa [#allocation4], 1 }
 0x5a6   :  { %424 = vsyncpa [#allocation7], 1 }
 0x5a7   :  { %425 = vsyncpa [#allocation10], 1 }
 0x5a8   :  { %426 = vsyncpa [#allocation13], 1 }
 0x5a9   :  { %427 = vsyncpa [#allocation16], 1 }
 0x5aa   :  { %428 = vsyncpa [#allocation5], 1 }

</bundles_post_ra>
